<compile_context>
chip_gen: v5e
topology: v5e:2x2
jax: 0.10.0
libtpu: 0.0.40
codegen_flags: <defaults>
</compile_context>

<pallas_src>
import math

import jax
import jax.numpy as jnp
from jax.experimental import pallas as pl
from jax.experimental.pallas import tpu as pltpu


def _copy_kernel(x_ref, o_ref):
    # Pure pass-through of one tile (unmasked vst when lane-dense).
    o_ref[...] = x_ref[...]


def _target_block_bytes() -> tuple[int, int]:
    """Returns (target bytes per block, min grid steps) per TPU generation."""
    kind = ""
    try:
        kind = jax.devices()[0].device_kind.lower()
    except Exception:
        pass
    if "v7" in kind:
        # ~3.2 TB/s HBM: 4 MiB blocks keep the ~0.35 us/step overhead <10%.
        # 2 input + 2 output buffers = 16 MiB, inside the 32 MiB scoped slice
        # of v7x's 64 MiB physical VMEM.  min 2 grid steps -> both TCs work.
        return 4 * 1024 * 1024, 2
    if "v6" in kind:
        # ~1.4 TB/s: 3 MiB blocks -> >90% of roofline; 12 MiB total buffers.
        return 3 * 1024 * 1024, 1
    if "v5" in kind:
        # ~0.82 TB/s and 16 MiB scoped VMEM default: 4 x 2 MiB = 8 MiB.
        return 2 * 1024 * 1024, 1
    return 2 * 1024 * 1024, 1


def _pack_rows(itemsize: int) -> int:
    # Minimum sublane multiple per dtype packing:
    # (8,128) f32, (16,128) bf16/f16, (32,128) int8/fp8.
    return {4: 8, 2: 16, 1: 32}.get(itemsize, 8)


def _pick_leading_tile(n_rows: int, row_bytes: int, pack: int,
                       target_bytes: int, min_blocks: int) -> int:
    """Bytes-targeted, pack-aligned tile for the leading (tiled) dimension."""
    if n_rows <= pack:
        return n_rows  # full-extent block (always legal)
    t = max(1, target_bytes // max(1, row_bytes))
    t = max(pack, (t // pack) * pack)
    t = min(t, ((n_rows + pack - 1) // pack) * pack)
    # Keep at least `min_blocks` grid steps so megacore (v7x) can split work.
    while min_blocks > 1 and pl.cdiv(n_rows, t) < min_blocks and t > pack:
        t = max(pack, ((t // 2) // pack) * pack)
    return t


def _pallas_identity_copy(x: jax.Array) -> jax.Array:
    """Materialized identity via a roofline-tuned Pallas copy."""
    if x.size == 0 or x.ndim == 0:
        return x

    itemsize = jnp.dtype(x.dtype).itemsize
    target_bytes, min_blocks = _target_block_bytes()
    pack = _pack_rows(itemsize)

    if x.shape[-1] % 128 == 0:
        # Lane-dense path: collapse leading dims only.  This is metadata-only
        # because the last dim is already a multiple of 128, so stores are
        # unmasked `vst`.
        cols = x.shape[-1]
        rows = x.size // cols
        x_in = x.reshape(rows, cols)
        row_bytes = cols * itemsize
        tile = _pick_leading_tile(rows, row_bytes, pack, target_bytes,
                                  min_blocks)
        grid = (pl.cdiv(rows, tile),)
        block = (tile, cols)
        index_map = lambda i: (i, 0)
        out_shape = jax.ShapeDtypeStruct((rows, cols), x.dtype)
        reshape_back = True
    else:
        # Last dim is not lane-aligned: do NOT reshape (XLA would insert HBM
        # relayout copies around the pallas_call).  Tile the leading dim and
        # keep trailing dims at full extent, which satisfies the (8,128)
        # block constraint.
        if x.ndim == 1:
            # TODO(synk): tiny non-lane-aligned 1-D copy; identity is exact.
            return x
        lead = x.shape[0]
        row_bytes = (x.size // lead) * itemsize
        lead_pack = pack if x.ndim == 2 else 1  # leading dim is sublane only in 2-D
        tile = _pick_leading_tile(lead, row_bytes, lead_pack, target_bytes,
                                  min_blocks)
        grid = (pl.cdiv(lead, tile),)
        block = (tile,) + x.shape[1:]
        ndim = x.ndim
        index_map = lambda i, _n=ndim: (i,) + (0,) * (_n - 1)
        x_in = x
        out_shape = jax.ShapeDtypeStruct(x.shape, x.dtype)
        reshape_back = False

    block_bytes = math.prod(block) * itemsize
    nbytes = x.size * itemsize
    # 2 input buffers + 2 output buffers (double buffering) plus slack.
    vmem_limit = min(48 * 1024 * 1024,
                     max(16 * 1024 * 1024, 4 * block_bytes + (2 << 20)))

    out = pl.pallas_call(
        _copy_kernel,
        out_shape=out_shape,
        grid=grid,
        in_specs=[pl.BlockSpec(block, index_map)],
        out_specs=pl.BlockSpec(block, index_map),
        compiler_params=pltpu.CompilerParams(
            dimension_semantics=("parallel",),
            vmem_limit_bytes=vmem_limit,
        ),
        cost_estimate=pl.CostEstimate(
            flops=0, transcendentals=0, bytes_accessed=2 * nbytes),
    )(x_in)
    return out.reshape(x.shape) if reshape_back else out


def txt_encoder_forward(txt_input: jax.Array, *,
                        materialize: bool = False) -> jax.Array:
    """Pallas implementation of TxtEncoder.forward (identity).

    Default (materialize=False): return the input directly — zero HBM
    traffic, zero launch overhead; exact and optimal for an identity module.

    materialize=True: produce a fresh output buffer via the roofline-tuned
    Pallas copy kernel.
    """
    if not materialize:
        return txt_input
    return _pallas_identity_copy(txt_input)


if __name__ == "__main__":
    # TxtEncoder.__init__ defines no parameters; only the input matters.
    key = jax.random.PRNGKey(0)
    batch, seq, hidden = 2, 8, 32
    txt_input = jax.random.normal(key, (batch, seq, hidden), dtype=jnp.float32)

    # Fast path (what production code should use): pure identity, no kernel.
    out_fast = jax.block_until_ready(txt_encoder_forward(txt_input))
    assert out_fast.shape == txt_input.shape
    assert out_fast.dtype == txt_input.dtype
    assert bool(jnp.all(out_fast == txt_input))

    # Kernel path on the module's shape: hidden=32 is not lane-aligned, so
    # this exercises the N-D full-extent-trailing tiling (no relayout).
    out_copy = jax.block_until_ready(
        txt_encoder_forward(txt_input, materialize=True))
    assert out_copy.shape == txt_input.shape
    assert out_copy.dtype == txt_input.dtype
    assert bool(jnp.all(out_copy == txt_input))

    # Kernel path on a lane-aligned bf16 input: exercises the lane-dense
    # (rows, 128k) path with dtype-aware (16,128) sublane packing.
    x_aligned = jax.random.normal(jax.random.PRNGKey(0), (batch, seq, 256),
                                  dtype=jnp.bfloat16)
    out_aligned = jax.block_until_ready(
        txt_encoder_forward(x_aligned, materialize=True))
    assert out_aligned.shape == x_aligned.shape
    assert out_aligned.dtype == x_aligned.dtype
    assert bool(jnp.all(out_aligned == x_aligned))

    print("KERNEL_OK")
</pallas_src>

<mosaic_0001>
module attributes {stable_mosaic.version = 11 : i64} {
  func.func @_copy_kernel(%arg0: i32, %arg1: memref<2x8x32xf32, #tpu.memory_space<vmem>>, %arg2: memref<2x8x32xf32, #tpu.memory_space<vmem>>) attributes {dimension_semantics = [#tpu.dimension_semantics<parallel>], iteration_bounds = array<i64: 1>, scalar_prefetch = 0 : i64, scratch_operands = 0 : i64, tpu.core_type = #tpu.core_type<tc>, window_params = [{transform_indices = @transform_0, window_bounds = array<i64: 2, 8, 32>}, {transform_indices = @transform_1, window_bounds = array<i64: 2, 8, 32>}]} {
    %c0 = arith.constant 0 : index
    %c0_0 = arith.constant 0 : index
    %c0_1 = arith.constant 0 : index
    %0 = vector.load %arg1[%c0, %c0_0, %c0_1] : memref<2x8x32xf32, #tpu.memory_space<vmem>>, vector<2x8x32xf32>
    %c0_2 = arith.constant 0 : index
    %c0_3 = arith.constant 0 : index
    %c0_4 = arith.constant 0 : index
    %1 = vector.load %arg2[%c0_2, %c0_3, %c0_4] : memref<2x8x32xf32, #tpu.memory_space<vmem>>, vector<2x8x32xf32>
    tpu.vector_store %arg2[%c0_2, %c0_3, %c0_4], %0 {strides = array<i32>} : memref<2x8x32xf32, #tpu.memory_space<vmem>>, vector<2x8x32xf32>,
    return
  }
  func.func @transform_0(%arg0: i32) -> (i32, i32, i32) {
    %c0_i32 = arith.constant 0 : i32
    %c0_i32_0 = arith.constant 0 : i32
    %c0_i32_1 = arith.constant 0 : i32
    return %arg0, %c0_i32, %c0_i32_0 : i32, i32, i32
  }
  func.func @transform_1(%arg0: i32) -> (i32, i32, i32) {
    %c0_i32 = arith.constant 0 : i32
    %c0_i32_0 = arith.constant 0 : i32
    %c0_i32_1 = arith.constant 0 : i32
    return %arg0, %c0_i32, %c0_i32_0 : i32, i32, i32
  }
}

</mosaic_0001>

<bundles_post_ra>
// kernel: tpu_custom_call.1
= control target key start
LH: loop header
LB: loop body
LE: loop exit
PB: predicated region body
PF: predicated region fallthrough
CT: control target
= control target key end

     0   :  { %6 = vsyncpa [#allocation3], 0  ;;  %s125_s0 = inlined_call_operand.hbm [shape: f32[2,8,32], index: 0, kind: input, shape index: {}]   ;;  %s126_s1 = inlined_call_operand.hbm [shape: f32[2,8,32], index: 1, kind: output, shape index: {}]  }
   0x1   :  { %7 = vsyncpa [#allocation4], 0  ;;  %s12_s8 = sshll.u32 %s125_s0, 4  ;;  %s105_s9 = smov [#allocation2]   ;;  %s13_s8 = int_to_ptr.hbm [resolvable:$true] %s12_s8 }
   0x2   :  { %s14_s10 = sshll.u32 %s105_s9, 4  ;;  %s106_s11 = smov 128   ;;  %s15_s10 = int_to_ptr.vmem [resolvable:$true] %s14_s10 }
   0x3   :  { %s107_s12 = smov 8  }
   0x4   :  { %20 = dma.hbm_to_vmem [thread:$0]  %s13_s8, 256, %s15_s10, [#allocation3], %s106_s11, %s106_s11, %s107_s12  }
   0x5   :  { %101 = dma.done.wait [#allocation3], 256  }
   0x6   :  { %102 = vsyncadd [#allocation3], 4294967040  ;;  %s108_s13 = smov [#allocation5]   ;;  %s36_s17 = sshll.u32 %s126_s1, 4  ;;  %vm27_vm0 = vcmask 261120   ;;  %v25_v0 = vld [vmem:[#allocation2] sm:$0xff]  ;;  %s37_s17 = int_to_ptr.hbm [resolvable:$true] %s36_s17 }
   0x7   :  { %s34_s14 = sshll.u32 %s108_s13, 4  ;;  %v26_v1 = vld [vmem:[#allocation2 + $0x8] sm:$0xff]  ;;  %28 = vst.msk [vmem:[#allocation5] sm:$0xff] %vm27_vm0, %v25_v0  ;;  %s35_s14 = int_to_ptr.vmem [resolvable:$true] %s34_s14 }
   0x8   :  { %29 = vst.msk [vmem:[#allocation5 + $0x8] sm:$0xff] %vm27_vm0, %v26_v1 }
   0x9   :  { %42 = dma.vmem_to_hbm [thread:$0]  %s35_s14, 256, %s37_s17, [#allocation4], %s106_s11, %s106_s11, %s107_s12  }
   0xa   :  { %103 = dma.done.wait [#allocation4], 256  }
   0xb   :  { %104 = vsyncadd [#allocation4], 4294967040 }
   0xc   :  { %47 = vsyncpa [#allocation3], 1 }
   0xd   :  { %48 = vsyncpa [#allocation4], 1 }

</bundles_post_ra>
